<compile_context>
chip_gen: v6e
topology: v6e:2x2x1
jax: 0.10.0
libtpu: 0.0.40
codegen_flags: <defaults>
</compile_context>

<pallas_src>
import functools

import jax
import jax.numpy as jnp
from jax import lax
from jax.experimental import pallas as pl
from jax.experimental.pallas import tpu as pltpu

BN_EPS = 1e-5


def _round_up(a, b):
    return (a + b - 1) // b * b


# --------- pass 1: conv as one im2col matmul + per-tile BN partial sums ---------
def _conv_stats_kernel(p_ref, w_ref, y_ref, stats_ref, *, m_valid):
    """p_ref:(tM,K) bf16, w_ref:(K,Cout) bf16,
    y_ref:(tM,Cout) f32, stats_ref:(1,2,Cout) f32 = per-tile [sum, sumsq]."""
    acc = jnp.dot(p_ref[...], w_ref[...],
                  preferred_element_type=jnp.float32)          # MXU, f32 accumulate
    # TODO(synk): y is stored (tM, Cout) -> masked narrow-lane store for small Cout;
    # an in-kernel relayout to (tM/Wo, Wo*Cout) would trade a VMEM shuffle for it.
    y_ref[...] = acc

    # Mask rows that are only padding of the row-tiled im2col matrix so the
    # BatchNorm statistics stay exact under tiling.
    tm = p_ref.shape[0]
    row = pl.program_id(0) * tm + lax.broadcasted_iota(jnp.int32, (tm, 1), 0)
    valid = (row < m_valid).astype(jnp.float32)
    accv = acc * valid
    s = jnp.sum(accv, axis=0, keepdims=True)                   # (1, Cout)
    sq = jnp.sum(accv * acc, axis=0, keepdims=True)            # (1, Cout)
    stats_ref[...] = jnp.concatenate([s, sq], axis=0)[None, :, :]


# --------- pass 2: BatchNorm affine (global stats) + SiLU, lane-dense ------------
def _bn_silu_kernel(y_ref, scale_ref, shift_ref, o_ref):
    y = y_ref[...] * scale_ref[...] + shift_ref[...]
    o_ref[...] = y * jax.nn.sigmoid(y)


def conv_layer_forward(x_nchw, weight_oikk, gamma, beta,
                       stride=(1, 1), groups=1, tm_rows=512, tr_rows=512):
    """Forward of ConvLayer. x:(N,Cin,H,W), weight:(Cout,Cin,KH,KW) -> (N,Cout,H,W)."""
    # TODO(synk): only stride=1 / groups=1 (the ConvLayer defaults) are lowered here;
    # strided / grouped conv would need a strided gather and per-group matmuls.
    assert stride == (1, 1) and groups == 1

    N, Cin, H, W = x_nchw.shape
    Cout, _, KH, KW = weight_oikk.shape
    ph, pw = (KH - 1) // 2, (KW - 1) // 2
    Ho, Wo = H, W  # stride 1, "same" padding (odd kernel sizes)

    # ---- glue: pad, NCHW->NHWC, im2col so the contraction dim is KH*KW*Cin ----
    x_pad = jnp.pad(x_nchw, ((0, 0), (0, 0), (ph, ph), (pw, pw)))
    x_nhwc = jnp.transpose(x_pad, (0, 2, 3, 1))                    # (N,Hp,Wp,Cin)
    cols = [x_nhwc[:, kh:kh + Ho, kw:kw + Wo, :]
            for kh in range(KH) for kw in range(KW)]
    patches = jnp.concatenate(cols, axis=-1)                       # (N,Ho,Wo,K)
    K = KH * KW * Cin
    M = N * Ho * Wo
    patches = patches.reshape(M, K).astype(jnp.bfloat16)           # bf16 MXU inputs
    w_mat = (jnp.transpose(weight_oikk, (2, 3, 1, 0))
             .reshape(K, Cout).astype(jnp.bfloat16))

    # ---- row-tile sizes (bounded by a conservative per-operand VMEM budget) ----
    def _row_cap(bytes_per_row):
        return max(8, (4 * 1024 * 1024 // max(bytes_per_row, 1)) // 8 * 8)

    tm = min(_round_up(M, 8), _round_up(tm_rows, 8),
             _row_cap(max(K, 128) * 2 + 128 * 4))
    m_pad = _round_up(M, tm)
    if m_pad != M:
        patches = jnp.pad(patches, ((0, m_pad - M), (0, 0)))
    grid_m = m_pad // tm

    cparams = pltpu.CompilerParams(
        dimension_semantics=("parallel",),        # independent row tiles -> 2 TCs on v7x
        vmem_limit_bytes=32 * 1024 * 1024,        # safe on v5e/v6e (128 MiB) and v7x (64 MiB)
    )

    y_flat, stats = pl.pallas_call(
        functools.partial(_conv_stats_kernel, m_valid=M),
        grid=(grid_m,),
        in_specs=[
            pl.BlockSpec((tm, K), lambda i: (i, 0)),
            pl.BlockSpec((K, Cout), lambda i: (0, 0)),
        ],
        out_specs=[
            pl.BlockSpec((tm, Cout), lambda i: (i, 0)),
            pl.BlockSpec((1, 2, Cout), lambda i: (i, 0, 0)),
        ],
        out_shape=(
            jax.ShapeDtypeStruct((m_pad, Cout), jnp.float32),
            jax.ShapeDtypeStruct((grid_m, 2, Cout), jnp.float32),
        ),
        compiler_params=cparams,
    )(patches, w_mat)

    # ---- finalize exact batch statistics (parameter-sized glue) ----
    ssum = jnp.sum(stats[:, 0, :], axis=0)                         # (Cout,)
    ssq = jnp.sum(stats[:, 1, :], axis=0)                          # (Cout,)
    mean = ssum / M
    var = ssq / M - mean * mean                                    # biased (training BN)
    scale_c = gamma.astype(jnp.float32) * lax.rsqrt(var + BN_EPS)
    shift_c = beta.astype(jnp.float32) - mean * scale_c

    # ---- lane-dense repack for the elementwise pass: (N*Ho, Wo*Cout) ----
    R, L = N * Ho, Wo * Cout
    y2 = y_flat[:M].reshape(R, L)                                  # free reshape (same bytes)
    scale_row = jnp.tile(scale_c, (Wo,)).reshape(1, L)
    shift_row = jnp.tile(shift_c, (Wo,)).reshape(1, L)

    tr = min(_round_up(R, 8), _round_up(tr_rows, 8), _row_cap(L * 4 * 2))
    r_pad = _round_up(R, tr)
    if r_pad != R:
        y2 = jnp.pad(y2, ((0, r_pad - R), (0, 0)))
    grid_r = r_pad // tr

    out2 = pl.pallas_call(
        _bn_silu_kernel,
        grid=(grid_r,),
        in_specs=[
            pl.BlockSpec((tr, L), lambda i: (i, 0)),
            pl.BlockSpec((1, L), lambda i: (0, 0)),
            pl.BlockSpec((1, L), lambda i: (0, 0)),
        ],
        out_specs=pl.BlockSpec((tr, L), lambda i: (i, 0)),
        out_shape=jax.ShapeDtypeStruct((r_pad, L), jnp.float32),
        compiler_params=cparams,
    )(y2, scale_row, shift_row)

    # TODO(synk): keep NHWC if the downstream consumer accepts it; the transpose back
    # to NCHW is pure layout tax needed only to match the PyTorch interface.
    out_nhwc = out2[:R].reshape(N, Ho, Wo, Cout)
    return jnp.transpose(out_nhwc, (0, 3, 1, 2)).astype(x_nchw.dtype)


def reference_forward(x_nchw, weight_oikk, gamma, beta):
    """Pure-JAX reference (conv + training-mode BN + SiLU), NCHW."""
    KH, KW = weight_oikk.shape[2], weight_oikk.shape[3]
    ph, pw = (KH - 1) // 2, (KW - 1) // 2
    y = lax.conv_general_dilated(
        x_nchw.astype(jnp.float32), weight_oikk.astype(jnp.float32),
        window_strides=(1, 1), padding=((ph, ph), (pw, pw)),
        dimension_numbers=("NCHW", "OIHW", "NCHW"))
    mean = jnp.mean(y, axis=(0, 2, 3), keepdims=True)
    var = jnp.mean(jnp.square(y - mean), axis=(0, 2, 3), keepdims=True)
    y = (y - mean) * lax.rsqrt(var + BN_EPS)
    y = y * gamma.reshape(1, -1, 1, 1) + beta.reshape(1, -1, 1, 1)
    return y * jax.nn.sigmoid(y)


if __name__ == "__main__":
    # ConvLayer(in_channel=4, out_channel=8, kernel_size=3)  (defaults: stride=1,
    # groups=1, bias=False, use_norm=True, use_activation=True)
    N, Cin, H, W = 2, 4, 16, 16
    Cout, KH, KW = 8, 3, 3

    key = jax.random.PRNGKey(0)
    kx, kw, kg, kb = jax.random.split(key, 4)
    x = jax.random.normal(kx, (N, Cin, H, W), jnp.float32)
    weight = 0.1 * jax.random.normal(kw, (Cout, Cin, KH, KW), jnp.float32)
    gamma = 1.0 + 0.1 * jax.random.normal(kg, (Cout,), jnp.float32)
    beta = 0.1 * jax.random.normal(kb, (Cout,), jnp.float32)

    # tm_rows=128 -> 4 grid steps in pass 1, exercising cross-tile BN statistics.
    out = conv_layer_forward(x, weight, gamma, beta, tm_rows=128)
    out = jax.block_until_ready(out)

    ref = reference_forward(x, weight, gamma, beta)
    assert out.shape == (N, Cout, H, W), out.shape
    err = jnp.max(jnp.abs(out - ref))
    if not bool(err < 5e-2):
        raise AssertionError(f"mismatch vs reference, max abs err = {err}")

    print("KERNEL_OK")
</pallas_src>

<mosaic_0001>
module attributes {stable_mosaic.version = 11 : i64} {
  func.func @_conv_stats_kernel(%arg0: i32, %arg1: memref<128x36xbf16, #tpu.memory_space<vmem>>, %arg2: memref<36x8xbf16, #tpu.memory_space<vmem>>, %arg3: memref<128x8xf32, #tpu.memory_space<vmem>>, %arg4: memref<1x2x8xf32, #tpu.memory_space<vmem>>) attributes {dimension_semantics = [#tpu.dimension_semantics<parallel>], iteration_bounds = array<i64: 4>, scalar_prefetch = 0 : i64, scratch_operands = 0 : i64, tpu.core_type = #tpu.core_type<tc>, window_params = [{transform_indices = @transform_0, window_bounds = array<i64: 128, 36>}, {pipeline_mode = #tpu.pipeline_mode<synchronous>, transform_indices = @transform_1, window_bounds = array<i64: 36, 8>}, {transform_indices = @transform_2, window_bounds = array<i64: 128, 8>}, {transform_indices = @transform_3, window_bounds = array<i64: 1, 2, 8>}]} {
    %c0 = arith.constant 0 : index
    %c0_0 = arith.constant 0 : index
    %0 = vector.load %arg1[%c0, %c0_0] : memref<128x36xbf16, #tpu.memory_space<vmem>>, vector<128x36xbf16>
    %c0_1 = arith.constant 0 : index
    %c0_2 = arith.constant 0 : index
    %1 = vector.load %arg2[%c0_1, %c0_2] : memref<36x8xbf16, #tpu.memory_space<vmem>>, vector<36x8xbf16>
    %cst = arith.constant dense<0.000000e+00> : vector<128x8xf32>
    %2 = tpu.matmul %0, %1, %cst {dimension_numbers = #tpu.dot_dimension_numbers<[1], [0], [0], [1], [0, 0, 1, 1], [], []>} : vector<128x36xbf16>, vector<36x8xbf16>, vector<128x8xf32> -> vector<128x8xf32>
    %c0_3 = arith.constant 0 : index
    %c0_4 = arith.constant 0 : index
    %3 = vector.load %arg3[%c0_3, %c0_4] : memref<128x8xf32, #tpu.memory_space<vmem>>, vector<128x8xf32>
    tpu.vector_store %arg3[%c0_3, %c0_4], %2 {strides = array<i32>} : memref<128x8xf32, #tpu.memory_space<vmem>>, vector<128x8xf32>,
    %c128_i32 = arith.constant 128 : i32
    %4 = arith.muli %arg0, %c128_i32 : i32
    %5 = tpu.iota {dimensions = array<i32: 0>} : vector<128x1xi32>
    %6 = vector.broadcast %4 : i32 to vector<128x1xi32>
    %7 = arith.addi %6, %5 : vector<128x1xi32>
    %c512_i32 = arith.constant 512 : i32
    %8 = vector.broadcast %c512_i32 : i32 to vector<128x1xi32>
    %9 = arith.cmpi slt, %7, %8 : vector<128x1xi32>
    %10 = arith.extui %9 : vector<128x1xi1> to vector<128x1xi32>
    %11 = arith.sitofp %10 : vector<128x1xi32> to vector<128x1xf32>
    %12 = vector.broadcast %11 : vector<128x1xf32> to vector<128x8xf32>
    %13 = arith.mulf %2, %12 : vector<128x8xf32>
    %cst_5 = arith.constant dense<0.000000e+00> : vector<8xf32>
    %14 = vector.multi_reduction <add>, %13, %cst_5 [0] : vector<128x8xf32> to vector<8xf32>
    %15 = vector.shape_cast %14 : vector<8xf32> to vector<1x8xf32>
    %16 = arith.mulf %13, %2 : vector<128x8xf32>
    %cst_6 = arith.constant dense<0.000000e+00> : vector<8xf32>
    %17 = vector.multi_reduction <add>, %16, %cst_6 [0] : vector<128x8xf32> to vector<8xf32>
    %18 = vector.shape_cast %17 : vector<8xf32> to vector<1x8xf32>
    %19 = tpu.concatenate %15, %18 in 0 : vector<1x8xf32>, vector<1x8xf32> -> vector<2x8xf32>
    %20 = vector.shape_cast %19 : vector<2x8xf32> to vector<1x2x8xf32>
    %c0_7 = arith.constant 0 : index
    %c0_8 = arith.constant 0 : index
    %c0_9 = arith.constant 0 : index
    %21 = vector.load %arg4[%c0_7, %c0_8, %c0_9] : memref<1x2x8xf32, #tpu.memory_space<vmem>>, vector<1x2x8xf32>
    tpu.vector_store %arg4[%c0_7, %c0_8, %c0_9], %20 {strides = array<i32>} : memref<1x2x8xf32, #tpu.memory_space<vmem>>, vector<1x2x8xf32>,
    return
  }
  func.func @transform_0(%arg0: i32) -> (i32, i32) {
    %c0_i32 = arith.constant 0 : i32
    %c0_i32_0 = arith.constant 0 : i32
    return %arg0, %c0_i32 : i32, i32
  }
  func.func @transform_1(%arg0: i32) -> (i32, i32) {
    %c0_i32 = arith.constant 0 : i32
    %c0_i32_0 = arith.constant 0 : i32
    %c0_i32_1 = arith.constant 0 : i32
    return %c0_i32, %c0_i32_0 : i32, i32
  }
  func.func @transform_2(%arg0: i32) -> (i32, i32) {
    %c0_i32 = arith.constant 0 : i32
    %c0_i32_0 = arith.constant 0 : i32
    return %arg0, %c0_i32 : i32, i32
  }
  func.func @transform_3(%arg0: i32) -> (i32, i32, i32) {
    %c0_i32 = arith.constant 0 : i32
    %c0_i32_0 = arith.constant 0 : i32
    %c0_i32_1 = arith.constant 0 : i32
    return %arg0, %c0_i32, %c0_i32_0 : i32, i32, i32
  }
}

</mosaic_0001>

<bundles_post_ra>
// kernel: tpu_custom_call.1
= control target key start
LH: loop header
LB: loop body
LE: loop exit
PB: predicated region body
PF: predicated region fallthrough
CT: control target
= control target key end

     0   :  { %9 = vsyncpa [#allocation3], 0  ;;  %s1220_s0 = inlined_call_operand.vmem [shape: bf16[512,36], index: 0, kind: input, shape index: {}]   ;;  %s1221_s1 = inlined_call_operand.vmem [shape: bf16[36,8], index: 1, kind: input, shape index: {}]   ;;  %s1222_s2 = inlined_call_operand.vmem [shape: f32[512,8], index: 2, kind: output, shape index: {0}]   ;;  %s1223_s3 = inlined_call_operand.hbm [shape: f32[4,2,8], index: 3, kind: output, shape index: {1}]  }
   0x1   :  { %11 = vsyncpa [#allocation3 + $0x1], 0  ;;  %s930_s12 = smov 0   ;;  %s932_s13 = smov 0  }
   0x2   :  { %s934_s14 = smov 0   ;;  %s936_s15 = smov 0  }
   0x3 LB: > { %s951_s16 = sadd.s32 4294967295, %s906_s15   ;;  %s705_s17 = sadd.s32 4294967294, %s906_s15   ;;  %s906_s15 = sphi %s936_s15, %s1229_s15   ;;  %s902_s14 = sphi %s934_s14, %s1228_s14   ;;  %s898_s13 = sphi %s932_s13, %s1227_s13   ;;  %s894_s12 = sphi %s930_s12, %s1226_s12  }
   0x4   : > { %s955_s18 = sadd.s32 1, %s906_s15   ;;  %s97_s19 = sadd.s32 1, %s902_s14 }
   0x5   : > { %s94_s20 = ssub.s32 %s906_s15, %s955_s18  ;;  %p107_p0 = scmp.ne.s32.totalorder %s902_s14, %s898_s13 }
   0x6   : > { %p95_p1 = scmp.eq.s32.totalorder %s94_s20, 0  ;;  %p108_p2 = scmp.eq.s32.totalorder %s951_s16, 3 }
   0x7   : > { %p113_p3 = scmp.ne.s32.totalorder %s898_s13, %s894_s12  ;;  %p114_p4 = scmp.eq.s32.totalorder %s705_s17, 3 }
   0x8   : > { %s966_s21 = scalar_select %p95_p1, %s902_s14, %s97_s19  }
   0x9   : > { %p968_p5 = por %p108_p2, %p107_p0  ;;  %p972_p6 = por %p114_p4, %p113_p3 }
   0xa   : > { %p708_p7 = scmp.ge.s32.totalorder %s906_s15, 1  ;;  %p144_p8 = scmp.lt.s32.totalorder %s906_s15, 5 }
   0xc   : > { %p145_p9 = pnand %p708_p7, %p144_p8 }
   0xd   : > { %s710_s28 = sshll.u32 (!%p145_p9), %s951_s16, 4  ;;  %s733_s8 = sshll.u32 (!%p145_p9), %s951_s16, 7 }
   0xe   : > { %148 = sbr.rel (%p145_p9) target bundleno = 292 (0x124), region = 28  ;;  %p174_p10 = scmp.lt.s32.totalorder (!%p145_p9), %s710_s28, 63 }
   0xf   : > { %s170_s19 = sand.u32 (!%p145_p9), 1, %s898_s13   ;;  %s751_s24 = sshll.u32 (!%p145_p9), %s951_s16, 5 }
  0x10   : > { %s709_s20 = sshll.u32 (!%p145_p9), %s170_s19, 1  ;;  %s1185_s29 = scalar_lea.hbm (!%p145_p9), %s1223_s3, %s751_s24 }
  0x11   : > { %s172_s25 = scalar_lea.vmem (!%p145_p9), [#allocation2], %s709_s20  ;;  %s604_s30 = scalar_lea.sflag (!%p145_p9), [#allocation3], %s170_s19 }
  0x12   : > { %s621_s26 = sshll.u32 (!%p145_p9), %s172_s25, 4  ;;  %s909_s16 = smov (!%p145_p9), [#allocation2]   ;;  %s622_s26 = int_to_ptr.vmem [resolvable:$true] %s621_s26 }
  0x13   : > { %v835_v0 = vld [vmem:[%s1221_s1 + $0x10] ss:$0 sps:$4 sm:$0x33]   ;;  %vm287_vm0 = vcmask 1041408   ;;  %v836_v1 = vld [vmem:[%s1221_s1 + $0x8] sm:$0xff]   ;;  %v837_v3 = vld [vmem:[%s1221_s1] sm:$0xff]   ;;  %v406_v12 = vlaneseq  ;;  %v1006_v15 = vstv %s733_s8 }
  0x14   : > { %793 = vmatprep.subr.msk.bf16.mxu0 %vm287_vm0, %v835_v0  ;;  %v289_v2 = vsel %vm287_vm0, %v835_v0, 0  ;;  %794 = vmatprep.subr.msk.bf16.mxu1 %vm287_vm0, %v835_v0  ;;  %s1231_s28 = smov (!%p174_p10, %s710_s28), 63  ;;  %vm262_vm1 = vcmask 293888   ;;  %vm388_vm3 = vcmask 64512   ;;  %v908_v34 = vmov 0.0   ;;  %s850_s5 = sshll.u32 %s909_s16, 4  ;;  %s851_s5 = int_to_ptr.vmem [resolvable:$false] %s850_s5 }
  0x15   : > { %766 = vmatpush3.bf16.msra.mxu0 %v289_v2  ;;  %790 = vmatpush3.bf16.msra.mxu1 %v289_v2  ;;  %s711_s4 = sshll.u32 %s1231_s28, 2  ;;  %v1002_v13 = vshrl.u32 %v406_v12, 7  ;;  %s713_s9 = sshll.u32 %s1231_s28, 3 }
  0x16   : > { %767 = vmatprep.subr.bf16.mxu0 %v836_v1  ;;  %788 = vmatprep.subr.bf16.mxu1 %v836_v1  ;;  %s177_s7 = scalar_lea.vmem %s1220_s0, %s711_s4  ;;  %s1026_s17 = scalar_lea.vmem %s1222_s2, %s713_s9 }
  0x17   : > { %v838_v4 = vld [vmem:[%s177_s7] sm:$0xff]   ;;  %v839_v5 = vld [vmem:[%s177_s7 + $0x8] sm:$0xff]   ;;  %v840_v6 = vld [vmem:[%s177_s7 + $0x10] sm:$0xff]   ;;  %v409_v14 = vadd.s32 16, %v1002_v13  ;;  %v424_v16 = vadd.s32 %v1006_v15, %v1002_v13  ;;  %v410_v17 = vadd.s32 24, %v1002_v13  ;;  %v408_v18 = vadd.s32 8, %v1002_v13  ;;  %p853_p0 = scmp.lt.s32.totalorder %s622_s26, %s851_s5 }
  0x18   : > { %771 = vmatprep.mubr.msk.bf16.mxu0 %vm262_vm1, %v838_v4  ;;  %v841_v7 = vld [vmem:[%s177_s7 + $0x20] sm:$0xff]   ;;  %v843_v8 = vld [vmem:[%s177_s7 + $0x28] sm:$0xff]   ;;  %v844_v9 = vld [vmem:[%s177_s7 + $0x30] sm:$0xff]   ;;  %v413_v20 = vadd.s32 48, %v1002_v13  ;;  %v411_v21 = vadd.s32 32, %v1002_v13  ;;  %v414_v22 = vadd.s32 56, %v1002_v13 }
  0x19   : > { %768 = vmatpush3.bf16.msra.mxu0 %v836_v1  ;;  %791 = vmatpush3.bf16.msra.mxu1 %v836_v1  ;;  %v842_v10 = vld [vmem:[%s177_s7 + $0x18] sm:$0xff]   ;;  %v426_v19 = vadd.s32 %v1006_v15, %v409_v14  ;;  %vm440_vm2 = vcmp.lt.s32.totalorder %v424_v16, 512  ;;  %v427_v23 = vadd.s32 %v1006_v15, %v410_v17  ;;  %v417_v24 = vadd.s32 80, %v1002_v13  ;;  %s846_s4 = scalar_lea.vmem %s622_s26, 32  ;;  %s852_s6 = scalar_lea.vmem %s851_s5, 64 }
  0x1a   : > { %769 = vmatprep.subr.bf16.mxu0 %v837_v3  ;;  %789 = vmatprep.subr.bf16.mxu1 %v837_v3  ;;  %v845_v11 = vld [vmem:[%s177_s7 + $0x38] sm:$0xff]   ;;  %v425_v25 = vadd.s32 %v1006_v15, %v408_v18  ;;  %v415_v26 = vadd.s32 64, %v1002_v13  ;;  %v418_v27 = vadd.s32 88, %v1002_v13  ;;  %v412_v28 = vadd.s32 40, %v1002_v13  ;;  %p847_p11 = scmp.ne.s32.totalorder %s622_s26, %s846_s4  ;;  %p854_p1 = scmp.lt.s32.totalorder %s852_s6, %s846_s4 }
  0x1b   : > { %779 = vmatprep.mubr.msk.bf16.mxu1 %vm262_vm1, %v841_v7  ;;  %vm442_vm4 = vcmp.lt.s32.totalorder %v426_v19, 512  ;;  %v430_v29 = vadd.s32 %v1006_v15, %v413_v20  ;;  %v428_v30 = vadd.s32 %v1006_v15, %v411_v21  ;;  %v431_v31 = vadd.s32 %v1006_v15, %v414_v22 }
  0x1c   : > { %v416_v32 = vadd.s32 72, %v1002_v13  ;;  %v734_v35 = vsel %vm440_vm2, 1.0, %v908_v34  ;;  %vm443_vm5 = vcmp.lt.s32.totalorder %v427_v23, 512  ;;  %v434_v36 = vadd.s32 %v1006_v15, %v417_v24  ;;  %p848_p12 = pnand %p847_p11, %p968_p5  ;;  %p855_p2 = por %p854_p1, %p853_p0 }
  0x1d   : > { %770 = vmatpush3.bf16.msra.mxu0 %v837_v3  ;;  %792 = vmatpush3.bf16.msra.mxu1 %v837_v3  ;;  %vm441_vm6 = vcmp.lt.s32.totalorder %v425_v25, 512  ;;  %v432_v37 = vadd.s32 %v1006_v15, %v415_v26  ;;  %v435_v38 = vadd.s32 %v1006_v15, %v418_v27  ;;  %v429_v39 = vadd.s32 %v1006_v15, %v412_v28 }
  0x1e   : > { %v736_v40 = vsel %vm442_vm4, 1.0, %v908_v34  ;;  %vm446_vm7 = vcmp.lt.s32.totalorder %v430_v29, 512  ;;  %vm444_vm8 = vcmp.lt.s32.totalorder %v428_v30, 512  ;;  %vm447_vm9 = vcmp.lt.s32.totalorder %v431_v31, 512  ;;  %p849_p13 = pneg %p848_p12 }
  0x1f   : > { %v433_v44 = vadd.s32 %v1006_v15, %v416_v32  ;;  %v737_v46 = vsel %vm443_vm5, 1.0, %v908_v34  ;;  %v735_v47 = vsel %vm441_vm6, 1.0, %v908_v34  ;;  %vm450_vm10 = vcmp.lt.s32.totalorder %v434_v36, 512 }
  0x20   : > { %772 = vmatmul.mubr.msk.bf16.vlgmr.msra.gmra.mxu0 %vm262_vm1, %v839_v5  ;;  %780 = vmatmul.mubr.msk.bf16.vlgmr.msra.gmra.mxu1 %vm262_vm1, %v843_v8  ;;  %vm448_vm11 = vcmp.lt.s32.totalorder %v432_v37, 512  ;;  %vm451_vm12 = vcmp.lt.s32.totalorder %v435_v38, 512  ;;  %vm445_vm13 = vcmp.lt.s32.totalorder %v429_v39, 512  ;;  %v740_v51 = vsel %vm446_vm7, 1.0, %v908_v34  ;;  %p856_p3 = pnand %p855_p2, %p849_p13 }
  0x21   : > { %775 = vmatprep.mubr.msk.bf16.mxu0 %vm262_vm1, %v840_v6  ;;  %783 = vmatprep.mubr.msk.bf16.mxu1 %vm262_vm1, %v844_v9  ;;  %v738_v52 = vsel %vm444_vm8, 1.0, %v908_v34  ;;  %v741_v53 = vsel %vm447_vm9, 1.0, %v908_v34  ;;  %vm449_vm14 = vcmp.lt.s32.totalorder %v433_v44, 512  ;;  %v1075_v59 = vsel %vm450_vm10, 1.0, %v908_v34 }
  0x22   : > { %v742_v60 = vsel %vm448_vm11, 1.0, %v908_v34  ;;  %v1081_v61 = vsel %vm451_vm12, 1.0, %v908_v34  ;;  %v739_v62 = vsel %vm445_vm13, 1.0, %v908_v34  ;;  %v743_v7 = vsel %vm449_vm14, 1.0, %v908_v34 }
  0x23   : > { %v419_v9 = vadd.s32 96, %v1002_v13  ;;  %v421_v19 = vadd.s32 112, %v1002_v13  ;;  %v420_v21 = vadd.s32 104, %v1002_v13  ;;  %v422_v31 = vadd.s32 120, %v1002_v13 }
  0x24   : > { %vm594_vm4 = vcmask 1040384  }
  0x25   : > { %v436_v29 = vadd.s32 %v1006_v15, %v419_v9 }
  0x27   : > { %vm452_vm15 = vcmp.lt.s32.totalorder %v436_v29, 512 }
  0x28   : > { %776 = vmatmul.mubr.msk.bf16.gmra.mxu0 %vm262_vm1, %v842_v10  ;;  %784 = vmatmul.mubr.msk.bf16.gmra.mxu1 %vm262_vm1, %v845_v11 }
  0xe0   : > { %v773_v33 = vpop.f32.mrf.mxu0  ;;  %v1041_v42 = vpop.f32.mrf.mxu1 }
  0xe1   : > { %391 = vst.msk [vmem:[%s1026_s17 + $0x10] sm:$0xff] %vm388_vm3, %v773_v33  ;;  %399 = vst.msk [vmem:[%s1026_s17 + $0x50] sm:$0xff] %vm388_vm3, %v1041_v42  ;;  %v490_v49 = vmul.f32 %v773_v33, %v736_v40 }
  0xe2   : > { %v325_v41 = vpop.f32.mrf.mxu0  ;;  %v1053_v48 = vpop.f32.mrf.mxu1 }
  0xe3   : > { %389 = vst.msk [vmem:[%s1026_s17] sm:$0xff] %vm388_vm3, %v325_v41  ;;  %v488_v43 = vmul.f32 %v734_v35, %v325_v41  ;;  %397 = vst.msk [vmem:[%s1026_s17 + $0x40] sm:$0xff] %vm388_vm3, %v1053_v48  ;;  %v543_v0 = vmul.f32 %v773_v33, %v490_v49  ;;  %v507_v4 = vsel %vm388_vm3, %v490_v49, 0.0  ;;  %v496_v39 = vmul.f32 %v742_v60, %v1053_v48 }
  0xe4   : > { %v774_v45 = vpop.f32.mrf.mxu0  ;;  %v1066_v54 = vpop.f32.mrf.mxu1  ;;  %v438_v49 = vadd.s32 %v1006_v15, %v421_v19  ;;  %v498_v60 = vmul.f32 %v1041_v42, %v1075_v59 }
  0xe5   : > { %392 = vst.msk [vmem:[%s1026_s17 + $0x18] sm:$0xff] %vm388_vm3, %v774_v45  ;;  %v541_v55 = vmul.f32 %v488_v43, %v325_v41  ;;  %v491_v56 = vmul.f32 %v774_v45, %v737_v46  ;;  %400 = vst.msk [vmem:[%s1026_s17 + $0x58] sm:$0xff] %vm388_vm3, %v1066_v54  ;;  %v504_v1 = vsel %vm388_vm3, %v488_v43, 0.0  ;;  %v560_v22 = vsel %vm388_vm3, %v543_v0, 0.0 }
  0xe6   : > { %v328_v50 = vpop.f32.mrf.mxu0  ;;  %v1085_v63 = vpop.f32.mrf.mxu1  ;;  %v437_v41 = vadd.s32 %v1006_v15, %v420_v21  ;;  %vm454_vm1 = vcmp.lt.s32.totalorder %v438_v49, 512  ;;  %v551_v9 = vmul.f32 %v1041_v42, %v498_v60 }
  0xe7   : > { %390 = vst.msk [vmem:[%s1026_s17 + $0x8] sm:$0xff] %vm388_vm3, %v328_v50  ;;  %v489_v57 = vmul.f32 %v735_v47, %v328_v50  ;;  %398 = vst.msk [vmem:[%s1026_s17 + $0x48] sm:$0xff] %vm388_vm3, %v1085_v63  ;;  %v557_v10 = vsel %vm388_vm3, %v541_v55, 0.0  ;;  %v544_v11 = vmul.f32 %v774_v45, %v491_v56  ;;  %v509_v23 = vsel %vm388_vm3, %v491_v56, 0.0 }
  0xe8   : > { %v777_v58 = vpop.f32.mrf.mxu0  ;;  %v1097_v8 = vpop.f32.mrf.mxu1  ;;  %vm453_vm0 = vcmp.lt.s32.totalorder %v437_v41, 512 }
  0xe9   : > { %v505_v2 = vsel %vm388_vm3, %v489_v57, 0.0  ;;  %v542_v3 = vmul.f32 %v489_v57, %v328_v50  ;;  %395 = vst.msk [vmem:[%s1026_s17 + $0x30] sm:$0xff] %vm388_vm3, %v777_v58  ;;  %403 = vst.msk [vmem:[%s1026_s17 + $0x70] sm:$0xff] %vm388_vm3, %v1097_v8  ;;  %v494_v24 = vmul.f32 %v777_v58, %v740_v51  ;;  %v562_v32 = vsel %vm388_vm3, %v544_v11, 0.0 }
  0xea   : > { %v506_v5 = vadd.f32 %v505_v2, %v504_v1  ;;  %v341_v6 = vpop.f32.mrf.mxu0  ;;  %v1108_v20 = vpop.f32.mrf.mxu1  ;;  %v439_v57 = vadd.s32 %v1006_v15, %v422_v31 }
  0xeb   : > { %v558_v12 = vsel %vm388_vm3, %v542_v3, 0.0  ;;  %393 = vst.msk [vmem:[%s1026_s17 + $0x20] sm:$0xff] %vm388_vm3, %v341_v6  ;;  %v492_v14 = vmul.f32 %v738_v52, %v341_v6  ;;  %401 = vst.msk [vmem:[%s1026_s17 + $0x60] sm:$0xff] %vm388_vm3, %v1108_v20  ;;  %v547_v13 = vmul.f32 %v777_v58, %v494_v24  ;;  %v515_v50 = vsel %vm388_vm3, %v494_v24, 0.0 }
  0xec   : > { %v508_v16 = vadd.f32 %v507_v4, %v506_v5  ;;  %v559_v17 = vadd.f32 %v558_v12, %v557_v10  ;;  %v778_v18 = vpop.f32.mrf.mxu0  ;;  %v1119_v30 = vpop.f32.mrf.mxu1  ;;  %v746_v3 = vsel %vm452_vm15, 1.0, %v908_v34  ;;  %v519_v4 = vsel %vm388_vm3, %v496_v39, 0.0 }
  0xed   : > { %v545_v25 = vmul.f32 %v492_v14, %v341_v6  ;;  %396 = vst.msk [vmem:[%s1026_s17 + $0x38] sm:$0xff] %vm388_vm3, %v778_v18  ;;  %v511_v33 = vsel %vm388_vm3, %v492_v14, 0.0  ;;  %v495_v35 = vmul.f32 %v778_v18, %v741_v53  ;;  %404 = vst.msk [vmem:[%s1026_s17 + $0x78] sm:$0xff] %vm388_vm3, %v1119_v30  ;;  %v497_v53 = vmul.f32 %v743_v7, %v1085_v63 }
  0xee   : > { %v561_v26 = vadd.f32 %v560_v22, %v559_v17  ;;  %v510_v27 = vadd.f32 %v509_v23, %v508_v16  ;;  %v344_v28 = vpop.f32.mrf.mxu0  ;;  %v376_v40 = vpop.f32.mrf.mxu1  ;;  %v568_v58 = vsel %vm388_vm3, %v547_v13, 0.0  ;;  %v499_v5 = vmul.f32 %v1066_v54, %v1081_v61 }
  0xef   : > { %394 = vst.msk [vmem:[%s1026_s17 + $0x28] sm:$0xff] %vm388_vm3, %v344_v28  ;;  %v493_v36 = vmul.f32 %v739_v62, %v344_v28  ;;  %v564_v43 = vsel %vm388_vm3, %v545_v25, 0.0  ;;  %402 = vst.msk [vmem:[%s1026_s17 + $0x68] sm:$0xff] %vm388_vm3, %v376_v40  ;;  %v548_v51 = vmul.f32 %v778_v18, %v495_v35  ;;  %v549_v62 = vmul.f32 %v496_v39, %v1053_v48 }
  0xf0   : > { %v512_v37 = vadd.f32 %v511_v33, %v510_v27  ;;  %v563_v38 = vadd.f32 %v562_v32, %v561_v26  ;;  %v517_v0 = vsel %vm388_vm3, %v495_v35, 0.0  ;;  %v550_v6 = vmul.f32 %v497_v53, %v1085_v63 }
  0xf1   : > { %v513_v44 = vsel %vm388_vm3, %v493_v36, 0.0  ;;  %v546_v45 = vmul.f32 %v493_v36, %v344_v28  ;;  %v570_v15 = vsel %vm388_vm3, %v548_v51, 0.0  ;;  %vm455_vm2 = vcmp.lt.s32.totalorder %v439_v57, 512 }
  0xf2   : > { %v565_v46 = vadd.f32 %v564_v43, %v563_v38  ;;  %v514_v47 = vadd.f32 %v513_v44, %v512_v37  ;;  %v747_v48 = vsel %vm453_vm0, 1.0, %v908_v34  ;;  %v572_v10 = vsel %vm388_vm3, %v549_v62, 0.0 }
  0xf3   : > { %v566_v52 = vsel %vm388_vm3, %v546_v45, 0.0  ;;  %v521_v11 = vsel %vm388_vm3, %v497_v53, 0.0  ;;  %v500_v12 = vmul.f32 %v746_v3, %v1108_v20  ;;  %v748_v61 = vsel %vm454_vm1, 1.0, %v908_v34 }
  0xf4   : > { %v516_v55 = vadd.f32 %v515_v50, %v514_v47  ;;  %v567_v56 = vadd.f32 %v566_v52, %v565_v46  ;;  %v523_v63 = vsel %vm388_vm3, %v498_v60, 0.0  ;;  %v552_v17 = vmul.f32 %v1066_v54, %v499_v5 }
  0xf5   : > { %v574_v18 = vsel %vm388_vm3, %v550_v6, 0.0  ;;  %v501_v19 = vmul.f32 %v747_v48, %v376_v40  ;;  %v749_v22 = vsel %vm455_vm2, 1.0, %v908_v34  ;;  %v576_v23 = vsel %vm388_vm3, %v551_v9, 0.0 }
  0xf6   : > { %v518_v1 = vadd.f32 %v517_v0, %v516_v55  ;;  %v569_v2 = vadd.f32 %v568_v58, %v567_v56  ;;  %v525_v24 = vsel %vm388_vm3, %v499_v5, 0.0  ;;  %v502_v25 = vmul.f32 %v1097_v8, %v748_v61 }
  0xf7   : > { %v553_v26 = vmul.f32 %v500_v12, %v1108_v20  ;;  %v578_v29 = vsel %vm388_vm3, %v552_v17, 0.0  ;;  %v527_v54 = vsel %vm388_vm3, %v500_v12, 0.0  ;;  %v503_v31 = vmul.f32 %v1119_v30, %v749_v22 }
  0xf8   : > { %v571_v59 = vadd.f32 %v570_v15, %v569_v2  ;;  %v520_v7 = vadd.f32 %v519_v4, %v518_v1  ;;  %v554_v32 = vmul.f32 %v501_v19, %v376_v40  ;;  %v555_v34 = vmul.f32 %v1097_v8, %v502_v25 }
  0xf9   : > { %v580_v36 = vsel %vm388_vm3, %v553_v26, 0.0  ;;  %v529_v37 = vsel %vm388_vm3, %v501_v19, 0.0  ;;  %v531_v39 = vsel %vm388_vm3, %v502_v25, 0.0  ;;  %v556_v41 = vmul.f32 %v1119_v30, %v503_v31 }
  0xfa   : > { %v522_v14 = vadd.f32 %v521_v11, %v520_v7  ;;  %v573_v16 = vadd.f32 %v572_v10, %v571_v59  ;;  %v582_v13 = vsel %vm388_vm3, %v554_v32, 0.0  ;;  %v584_v40 = vsel %vm388_vm3, %v555_v34, 0.0 }
  0xfb   : > { %v533_v45 = vsel %vm388_vm3, %v503_v31, 0.0  ;;  %v586_v47 = vsel %vm388_vm3, %v556_v41, 0.0  ;;  %vm596_vm3 = vcmask 58368  }
  0xfc   : > { %v524_v21 = vadd.f32 %v523_v63, %v522_v14  ;;  %v575_v42 = vadd.f32 %v574_v18, %v573_v16 }
  0xfe   : > { %v577_v27 = vadd.f32 %v576_v23, %v575_v42  ;;  %v526_v28 = vadd.f32 %v525_v24, %v524_v21 }
 0x100   : > { %v528_v33 = vadd.f32 %v527_v54, %v526_v28  ;;  %v579_v35 = vadd.f32 %v578_v29, %v577_v27 }
 0x102   : > { %v581_v38 = vadd.f32 %v580_v36, %v579_v35  ;;  %v530_v20 = vadd.f32 %v529_v37, %v528_v33 }
 0x104   : > { %v532_v43 = vadd.f32 %v531_v39, %v530_v20  ;;  %v583_v44 = vadd.f32 %v582_v13, %v581_v38 }
 0x106   : > { %v534_v8 = vadd.f32 %v533_v45, %v532_v43  ;;  %v585_v46 = vadd.f32 %v584_v40, %v583_v44 }
 0x108   : > { %v535_v49 = vrot.slane %v534_v8, 4  ;;  %v587_v50 = vadd.f32 %v586_v47, %v585_v46 }
 0x10a   : > { %v536_v51 = vadd.f32 %v535_v49, %v534_v8  ;;  %v588_v52 = vrot.slane %v587_v50, 4 }
 0x10c   : > { %v537_v53 = vrot.slane %v536_v51, 2  ;;  %v589_v30 = vadd.f32 %v588_v52, %v587_v50 }
 0x10e   : > { %v590_v55 = vrot.slane %v589_v30, 2  ;;  %v538_v56 = vadd.f32 %v537_v53, %v536_v51 }
 0x110   : > { %v539_v57 = vrot.slane %v538_v56, 1  ;;  %v591_v58 = vadd.f32 %v590_v55, %v589_v30 }
 0x112   : > { %v592_v60 = vrot.slane %v591_v58, 1  ;;  %v540_v62 = vadd.f32 %v539_v57, %v538_v56 }
 0x114   : > { %v593_v0 = vadd.f32 %v592_v60, %v591_v58 }
 0x116   : > { %v595_v1 = vsel %vm594_vm4, %v540_v62, %v593_v0 }
 0x117   : > { %597 = vst.msk [vmem:[%s172_s25] sm:$0x3] %vm596_vm3, %v595_v1 }
 0x118   : > { %859 = shalt.err (!%p856_p3)
}
 0x119   : > { %s860_s7 = scalar_lea.hbm %s1185_s29, 32  ;;  %s864_s10 = scalar_lea.hbm %s1223_s3, 128 }
 0x11a   : > { %p861_p4 = scmp.ne.s32.totalorder %s1185_s29, %s860_s7  ;;  %p865_p9 = scmp.lt.s32.totalorder %s1185_s29, %s1223_s3 }
 0x11b   : > { %p866_p10 = scmp.lt.s32.totalorder %s864_s10, %s860_s7 }
 0x11c   : > { %p862_p7 = pnand %p861_p4, %p968_p5 }
 0x11d   : > { %p867_p11 = por %p866_p10, %p865_p9 }
 0x11e   : > { %p863_p8 = pneg %p862_p7 }
 0x120   : > { %p868_p12 = pnand %p867_p11, %p863_p8 }
 0x122   : > { %871 = shalt.err (!%p868_p12)
}
 0x123   : > { %795 = dma.vmem_to_hbm [thread:$0]  (%p968_p5), %s622_s26, 32, %s1185_s29, %s604_s30  }
 0x124 PF: > { %p801_p13 = scmp.ge.s32.totalorder %s906_s15, 2  ;;  %s641_s19 = sand.u32 1, %s894_s12  }
 0x125   : > { %s642_s20 = scalar_lea.sflag [#allocation3], %s641_s19 }
 0x126   : > { %p798_p0 = pnand %p801_p13, %p972_p6 }
 0x128   : > { %p799_p1 = pneg %p798_p0 }
 0x12a   : > { %889 = dma.done.wait (%p799_p1), %s642_s20, 32  }
 0x12b   : > { %891 = vsyncadd (%p799_p1), %s642_s20, 4294967264  ;;  %p14_p2 = scmp.ge.s32.totalorder %s955_s18, 6   ;;  %s1226_s12 = smov %s898_s13 }
 0x12c   : > { %s1227_s13 = smov %s902_s14  ;;  %s1228_s14 = smov %s966_s21 }
 0x12d   : > { %s1229_s15 = smov %s955_s18  ;;  %16 = sbr.rel (!%p14_p2) target bundleno = 3 (0x3), region = 75 }
 0x132   :  { %647 = vsyncpa [#allocation3], 1 }
 0x133   :  { %649 = vsyncpa [#allocation3 + $0x1], 1 }

</bundles_post_ra>
